<compile_context>
chip_gen: v7x
topology: tpu7x:2x2x1
jax: 0.10.0
libtpu: 0.0.40
codegen_flags: <defaults>
</compile_context>

<pallas_src>
import functools

import jax
import jax.numpy as jnp
from jax import lax
from jax.experimental import pallas as pl
from jax.experimental.pallas import tpu as pltpu

_LANE = 128
_DEFAULT_TB = 1024  # max batch-tile rows (per review: 1024 on v5e/v6e/v7x)


def _round_up(x, m):
    return (x + m - 1) // m * m


# ----------------------------------------------------------------------------
# Pallas kernels
# ----------------------------------------------------------------------------
def _l2norm(y):
    # F.normalize(p=2, dim=1): y * rsqrt(sum(y^2) + eps).  rsqrt runs on the
    # EUP slot.  (PyTorch clamps the norm instead of adding eps; identical for
    # non-zero rows, and padded rows are sliced off in the wrapper.)
    sumsq = jnp.sum(y * y, axis=1, keepdims=True)
    return y * lax.rsqrt(sumsq + 1e-12)


def _backbone(x, w1, b1, w2, b2, w3, b3):
    # Linear + folded-BN + ReLU, three times.  BN scale/shift were folded into
    # w/b at prep time, so the kernel is MXU dot + bias + relu only.
    h = jnp.dot(x, w1, preferred_element_type=jnp.float32) + b1
    h = jnp.maximum(h, 0.0).astype(jnp.bfloat16)
    h = jnp.dot(h, w2, preferred_element_type=jnp.float32) + b2
    h = jnp.maximum(h, 0.0).astype(jnp.bfloat16)
    h = jnp.dot(h, w3, preferred_element_type=jnp.float32) + b3
    h = jnp.maximum(h, 0.0)
    return h  # f32


def _truth_kernel(x_ref, w1, b1, w2, b2, w3, b3, out_ref):
    # In-kernel bf16 cast of the streamed input (no wrapper-side copy pass).
    x = x_ref[...].astype(jnp.bfloat16)
    h = _backbone(x, w1[...], b1[...], w2[...], b2[...], w3[...], b3[...])
    out_ref[...] = _l2norm(h).astype(out_ref.dtype)


def _head_kernel(x_ref, w1, b1, w2, b2, w3, b3, wh, bh, out_ref, *, l2):
    x = x_ref[...].astype(jnp.bfloat16)
    h = _backbone(x, w1[...], b1[...], w2[...], b2[...], w3[...], b3[...])
    y = jnp.dot(h.astype(jnp.bfloat16), wh[...],
                preferred_element_type=jnp.float32) + bh[...]
    if l2:
        y = _l2norm(y)
    out_ref[...] = y.astype(out_ref.dtype)


# ----------------------------------------------------------------------------
# pallas_call wrapper
# ----------------------------------------------------------------------------
def _run_kernel(kernel, x, weights, out_width):
    n, in_dim = x.shape

    # Tile rows: at least 16 (bf16-output sublane packing), at most
    # _DEFAULT_TB, and sized so any non-tiny batch gives >=2 grid steps so
    # dimension_semantics=("parallel",) actually shards across v7x's two
    # TensorCores.
    tb = max(16, min(_DEFAULT_TB, _round_up(-(-n // 2), 16)))
    n_pad = _round_up(n, tb)
    if n_pad != n:
        x = jnp.pad(x, ((0, n_pad - n), (0, 0)))  # rows only, only when needed
    grid = (n_pad // tb,)

    # x streams in (tb, in_dim) tiles (last dim == full array dim, so no lane
    # padding is required); weights/biases have constant block indices so
    # Pallas fetches them once and keeps them VMEM-resident.
    in_specs = [pl.BlockSpec((tb, in_dim), lambda i: (i, 0))]
    for w in weights:
        in_specs.append(pl.BlockSpec(w.shape, lambda i: (0, 0)))
    out_specs = pl.BlockSpec((tb, out_width), lambda i: (i, 0))

    mid = weights[2].shape[1]
    has_head = len(weights) > 6
    flops = 2 * n_pad * (in_dim * mid + 2 * mid * mid
                         + (mid * out_width if has_head else 0))
    bytes_accessed = (int(x.size) * x.dtype.itemsize
                      + n_pad * out_width * 2              # bf16 output
                      + sum(int(w.size) * w.dtype.itemsize for w in weights))
    cost = pl.CostEstimate(flops=int(flops), transcendentals=int(n_pad),
                           bytes_accessed=int(bytes_accessed))

    return pl.pallas_call(
        kernel,
        out_shape=jax.ShapeDtypeStruct((n_pad, out_width), jnp.bfloat16),
        grid=grid,
        in_specs=in_specs,
        out_specs=out_specs,
        compiler_params=pltpu.CompilerParams(
            dimension_semantics=("parallel",)),
        cost_estimate=cost,
    )(x, *weights)


# ----------------------------------------------------------------------------
# Parameters
# ----------------------------------------------------------------------------
def init_fcnet_params(key, in_dim, mid_dim=256, low_dim=128, classify_num=2):
    """PyTorch-default init: Linear ~ U(-1/sqrt(fan_in), +), BatchNorm1d
    gamma=1 / beta=0 / running_mean=0 / running_var=1.  Linear weights are
    stored [in, out] (transposed vs nn.Linear) so the kernel computes
    y = x @ W + b."""
    def linear(k, fi, fo):
        kw, kb = jax.random.split(k)
        bound = 1.0 / float(jnp.sqrt(jnp.float32(fi)))
        w = jax.random.uniform(kw, (fi, fo), jnp.float32, -bound, bound)
        b = jax.random.uniform(kb, (1, fo), jnp.float32, -bound, bound)
        return w, b

    keys = jax.random.split(key, 5)
    p = {"in_dim": in_dim, "mid_dim": mid_dim, "low_dim": low_dim,
         "classify_num": classify_num}
    dims = [(in_dim, mid_dim), (mid_dim, mid_dim), (mid_dim, mid_dim)]
    for i, (fi, fo) in enumerate(dims, start=1):
        w, b = linear(keys[i - 1], fi, fo)
        p[f"w{i}"], p[f"b{i}"] = w, b
        p[f"bn{i}_gamma"] = jnp.ones((1, fo), jnp.float32)
        p[f"bn{i}_beta"] = jnp.zeros((1, fo), jnp.float32)
        p[f"bn{i}_mean"] = jnp.zeros((1, fo), jnp.float32)
        p[f"bn{i}_var"] = jnp.ones((1, fo), jnp.float32)
    p["w_ss"], p["b_ss"] = linear(keys[3], mid_dim, low_dim)
    p["w_cls"], p["b_cls"] = linear(keys[4], mid_dim, classify_num)
    return p


def prepare_fcnet_params(p, eps=1e-5):
    """Fold eval-mode BatchNorm into the Linear weights/bias, zero-pad the
    head-output dims to 128 lanes (lane-dense stores), and cast weights to
    bf16 (accumulation stays f32 on the MXU).  The input-feature dim is kept
    unpadded: the kernel uses the full array dim as the block width."""
    prep = {"in_dim": p["in_dim"], "mid_dim": p["mid_dim"],
            "low_dim": p["low_dim"], "classify_num": p["classify_num"]}

    for i in (1, 2, 3):
        scale = p[f"bn{i}_gamma"] / jnp.sqrt(p[f"bn{i}_var"] + eps)
        shift = p[f"bn{i}_beta"] - p[f"bn{i}_mean"] * scale
        w = p[f"w{i}"] * scale                      # per-output-column scale
        b = p[f"b{i}"] * scale + shift
        prep[f"w{i}"] = w.astype(jnp.bfloat16)
        prep[f"b{i}"] = b.astype(jnp.float32)

    def pad_head(w, b):
        fo = w.shape[1]
        fo_pad = _round_up(fo, _LANE)
        w_p = jnp.zeros((w.shape[0], fo_pad), jnp.float32).at[:, :fo].set(w)
        b_p = jnp.zeros((1, fo_pad), jnp.float32).at[:, :fo].set(b)
        return w_p.astype(jnp.bfloat16), b_p

    prep["w_ss"], prep["b_ss"] = pad_head(p["w_ss"], p["b_ss"])
    prep["w_cls"], prep["b_cls"] = pad_head(p["w_cls"], p["b_cls"])
    return prep


# ----------------------------------------------------------------------------
# Forward
# ----------------------------------------------------------------------------
def fcnet_forward(prep, x, truth_features=False,
                  self_supervised_features=False, classify=False):
    """Returns bf16 outputs (cast to f32 downstream if needed)."""
    n = x.shape[0]
    backbone = [prep["w1"], prep["b1"], prep["w2"], prep["b2"],
                prep["w3"], prep["b3"]]

    if truth_features:
        out = _run_kernel(_truth_kernel, x, backbone, prep["w3"].shape[1])
        return out if out.shape[0] == n else out[:n]
    elif self_supervised_features:
        k = functools.partial(_head_kernel, l2=True)
        out = _run_kernel(k, x, backbone + [prep["w_ss"], prep["b_ss"]],
                          prep["w_ss"].shape[1])
        low = prep["low_dim"]
        if out.shape[0] != n or out.shape[1] != low:
            out = out[:n, :low]
        return out
    elif classify:
        k = functools.partial(_head_kernel, l2=False)
        out = _run_kernel(k, x, backbone + [prep["w_cls"], prep["b_cls"]],
                          prep["w_cls"].shape[1])
        c = prep["classify_num"]
        if out.shape[0] != n or out.shape[1] != c:
            out = out[:n, :c]
        return out
    return None  # matches PyTorch forward when no flag is set


# ----------------------------------------------------------------------------
# Pure-JAX f32 reference (PyTorch eval semantics) for a sanity check
# ----------------------------------------------------------------------------
def _ref_forward(p, x, mode, eps=1e-5):
    h = x
    for i in (1, 2, 3):
        h = h @ p[f"w{i}"] + p[f"b{i}"]
        scale = p[f"bn{i}_gamma"] / jnp.sqrt(p[f"bn{i}_var"] + eps)
        shift = p[f"bn{i}_beta"] - p[f"bn{i}_mean"] * scale
        h = jnp.maximum(h * scale + shift, 0.0)
    if mode == "truth":
        return h / jnp.maximum(jnp.linalg.norm(h, axis=1, keepdims=True), 1e-12)
    if mode == "ss":
        y = h @ p["w_ss"] + p["b_ss"]
        return y / jnp.maximum(jnp.linalg.norm(y, axis=1, keepdims=True), 1e-12)
    return h @ p["w_cls"] + p["b_cls"]


if __name__ == "__main__":
    # Small shapes consistent with the module: flat [batch, in_dim] input.
    batch, in_dim, mid_dim, low_dim, classify_num = 8, 32, 128, 64, 2

    key = jax.random.PRNGKey(0)
    kp, kx = jax.random.split(key)
    raw_params = init_fcnet_params(kp, in_dim, mid_dim, low_dim, classify_num)
    prep = prepare_fcnet_params(raw_params)
    x = jax.random.normal(kx, (batch, in_dim), jnp.float32)

    out_truth = jax.block_until_ready(
        fcnet_forward(prep, x, truth_features=True))
    out_ss = jax.block_until_ready(
        fcnet_forward(prep, x, self_supervised_features=True))
    out_cls = jax.block_until_ready(
        fcnet_forward(prep, x, classify=True))

    assert out_truth.shape == (batch, mid_dim)
    assert out_ss.shape == (batch, low_dim)
    assert out_cls.shape == (batch, classify_num)

    # bf16 weights/activations/outputs -> compare against the f32 reference
    # with bf16-sized tolerances (truth/ss outputs are l2-normalized, <=1;
    # classifier logits are unbounded so allow a slightly looser bound).
    tols = {"truth": 5e-2, "ss": 5e-2, "cls": 1e-1}
    for got, mode in ((out_truth, "truth"), (out_ss, "ss"), (out_cls, "cls")):
        ref = _ref_forward(raw_params, x, mode)
        err = float(jnp.max(jnp.abs(got.astype(jnp.float32) - ref)))
        assert err < tols[mode], (mode, err)

    print("KERNEL_OK")
</pallas_src>

<mosaic_0001>
module attributes {stable_mosaic.version = 11 : i64} {
  func.func @_truth_kernel(%arg0: i32, %arg1: memref<16x32xf32, #tpu.memory_space<vmem>>, %arg2: memref<32x128xbf16, #tpu.memory_space<vmem>>, %arg3: memref<1x128xf32, #tpu.memory_space<vmem>>, %arg4: memref<128x128xbf16, #tpu.memory_space<vmem>>, %arg5: memref<1x128xf32, #tpu.memory_space<vmem>>, %arg6: memref<128x128xbf16, #tpu.memory_space<vmem>>, %arg7: memref<1x128xf32, #tpu.memory_space<vmem>>, %arg8: memref<16x128xbf16, #tpu.memory_space<vmem>>) attributes {dimension_semantics = [#tpu.dimension_semantics<parallel>], iteration_bounds = array<i64: 1>, scalar_prefetch = 0 : i64, scratch_operands = 0 : i64, tpu.core_type = #tpu.core_type<tc>, window_params = [{transform_indices = @transform_0, window_bounds = array<i64: 16, 32>}, {pipeline_mode = #tpu.pipeline_mode<synchronous>, transform_indices = @transform_1, window_bounds = array<i64: 32, 128>}, {pipeline_mode = #tpu.pipeline_mode<synchronous>, transform_indices = @transform_2, window_bounds = array<i64: 1, 128>}, {pipeline_mode = #tpu.pipeline_mode<synchronous>, transform_indices = @transform_3, window_bounds = array<i64: 128, 128>}, {pipeline_mode = #tpu.pipeline_mode<synchronous>, transform_indices = @transform_4, window_bounds = array<i64: 1, 128>}, {pipeline_mode = #tpu.pipeline_mode<synchronous>, transform_indices = @transform_5, window_bounds = array<i64: 128, 128>}, {pipeline_mode = #tpu.pipeline_mode<synchronous>, transform_indices = @transform_6, window_bounds = array<i64: 1, 128>}, {transform_indices = @transform_7, window_bounds = array<i64: 16, 128>}]} {
    %c0 = arith.constant 0 : index
    %c0_0 = arith.constant 0 : index
    %0 = vector.load %arg1[%c0, %c0_0] : memref<16x32xf32, #tpu.memory_space<vmem>>, vector<16x32xf32>
    %1 = arith.truncf %0 : vector<16x32xf32> to vector<16x32xbf16>
    %c0_1 = arith.constant 0 : index
    %c0_2 = arith.constant 0 : index
    %2 = vector.load %arg2[%c0_1, %c0_2] : memref<32x128xbf16, #tpu.memory_space<vmem>>, vector<32x128xbf16>
    %c0_3 = arith.constant 0 : index
    %c0_4 = arith.constant 0 : index
    %3 = vector.load %arg3[%c0_3, %c0_4] : memref<1x128xf32, #tpu.memory_space<vmem>>, vector<1x128xf32>
    %c0_5 = arith.constant 0 : index
    %c0_6 = arith.constant 0 : index
    %4 = vector.load %arg4[%c0_5, %c0_6] : memref<128x128xbf16, #tpu.memory_space<vmem>>, vector<128x128xbf16>
    %c0_7 = arith.constant 0 : index
    %c0_8 = arith.constant 0 : index
    %5 = vector.load %arg5[%c0_7, %c0_8] : memref<1x128xf32, #tpu.memory_space<vmem>>, vector<1x128xf32>
    %c0_9 = arith.constant 0 : index
    %c0_10 = arith.constant 0 : index
    %6 = vector.load %arg6[%c0_9, %c0_10] : memref<128x128xbf16, #tpu.memory_space<vmem>>, vector<128x128xbf16>
    %c0_11 = arith.constant 0 : index
    %c0_12 = arith.constant 0 : index
    %7 = vector.load %arg7[%c0_11, %c0_12] : memref<1x128xf32, #tpu.memory_space<vmem>>, vector<1x128xf32>
    %cst = arith.constant dense<0.000000e+00> : vector<16x128xf32>
    %8 = tpu.matmul %1, %2, %cst {dimension_numbers = #tpu.dot_dimension_numbers<[1], [0], [0], [1], [0, 0, 1, 1], [], []>} : vector<16x32xbf16>, vector<32x128xbf16>, vector<16x128xf32> -> vector<16x128xf32>
    %9 = vector.broadcast %3 : vector<1x128xf32> to vector<16x128xf32>
    %10 = arith.addf %8, %9 : vector<16x128xf32>
    %cst_13 = arith.constant 0.000000e+00 : f32
    %11 = vector.broadcast %cst_13 : f32 to vector<16x128xf32>
    %12 = arith.maximumf %10, %11 : vector<16x128xf32>
    %13 = arith.truncf %12 : vector<16x128xf32> to vector<16x128xbf16>
    %cst_14 = arith.constant dense<0.000000e+00> : vector<16x128xf32>
    %14 = tpu.matmul %13, %4, %cst_14 {dimension_numbers = #tpu.dot_dimension_numbers<[1], [0], [0], [1], [0, 0, 1, 1], [], []>} : vector<16x128xbf16>, vector<128x128xbf16>, vector<16x128xf32> -> vector<16x128xf32>
    %15 = vector.broadcast %5 : vector<1x128xf32> to vector<16x128xf32>
    %16 = arith.addf %14, %15 : vector<16x128xf32>
    %cst_15 = arith.constant 0.000000e+00 : f32
    %17 = vector.broadcast %cst_15 : f32 to vector<16x128xf32>
    %18 = arith.maximumf %16, %17 : vector<16x128xf32>
    %19 = arith.truncf %18 : vector<16x128xf32> to vector<16x128xbf16>
    %cst_16 = arith.constant dense<0.000000e+00> : vector<16x128xf32>
    %20 = tpu.matmul %19, %6, %cst_16 {dimension_numbers = #tpu.dot_dimension_numbers<[1], [0], [0], [1], [0, 0, 1, 1], [], []>} : vector<16x128xbf16>, vector<128x128xbf16>, vector<16x128xf32> -> vector<16x128xf32>
    %21 = vector.broadcast %7 : vector<1x128xf32> to vector<16x128xf32>
    %22 = arith.addf %20, %21 : vector<16x128xf32>
    %cst_17 = arith.constant 0.000000e+00 : f32
    %23 = vector.broadcast %cst_17 : f32 to vector<16x128xf32>
    %24 = arith.maximumf %22, %23 : vector<16x128xf32>
    %25 = arith.mulf %24, %24 : vector<16x128xf32>
    %cst_18 = arith.constant dense<0.000000e+00> : vector<16xf32>
    %26 = vector.multi_reduction <add>, %25, %cst_18 [1] : vector<16x128xf32> to vector<16xf32>
    %27 = vector.shape_cast %26 : vector<16xf32> to vector<16x1xf32>
    %cst_19 = arith.constant 9.99999996E-13 : f32
    %28 = vector.broadcast %cst_19 : f32 to vector<16x1xf32>
    %29 = arith.addf %27, %28 : vector<16x1xf32>
    %30 = math.rsqrt %29 : vector<16x1xf32>
    %31 = vector.broadcast %30 : vector<16x1xf32> to vector<16x128xf32>
    %32 = arith.mulf %24, %31 : vector<16x128xf32>
    %33 = arith.truncf %32 : vector<16x128xf32> to vector<16x128xbf16>
    %c0_20 = arith.constant 0 : index
    %c0_21 = arith.constant 0 : index
    %34 = vector.load %arg8[%c0_20, %c0_21] : memref<16x128xbf16, #tpu.memory_space<vmem>>, vector<16x128xbf16>
    tpu.vector_store %arg8[%c0_20, %c0_21], %33 {strides = array<i32>} : memref<16x128xbf16, #tpu.memory_space<vmem>>, vector<16x128xbf16>,
    return
  }
  func.func @transform_0(%arg0: i32) -> (i32, i32) {
    %c0_i32 = arith.constant 0 : i32
    %c0_i32_0 = arith.constant 0 : i32
    return %arg0, %c0_i32 : i32, i32
  }
  func.func @transform_1(%arg0: i32) -> (i32, i32) {
    %c0_i32 = arith.constant 0 : i32
    %c0_i32_0 = arith.constant 0 : i32
    %c0_i32_1 = arith.constant 0 : i32
    return %c0_i32, %c0_i32_0 : i32, i32
  }
  func.func @transform_2(%arg0: i32) -> (i32, i32) {
    %c0_i32 = arith.constant 0 : i32
    %c0_i32_0 = arith.constant 0 : i32
    %c0_i32_1 = arith.constant 0 : i32
    return %c0_i32, %c0_i32_0 : i32, i32
  }
  func.func @transform_3(%arg0: i32) -> (i32, i32) {
    %c0_i32 = arith.constant 0 : i32
    %c0_i32_0 = arith.constant 0 : i32
    %c0_i32_1 = arith.constant 0 : i32
    return %c0_i32, %c0_i32_0 : i32, i32
  }
  func.func @transform_4(%arg0: i32) -> (i32, i32) {
    %c0_i32 = arith.constant 0 : i32
    %c0_i32_0 = arith.constant 0 : i32
    %c0_i32_1 = arith.constant 0 : i32
    return %c0_i32, %c0_i32_0 : i32, i32
  }
  func.func @transform_5(%arg0: i32) -> (i32, i32) {
    %c0_i32 = arith.constant 0 : i32
    %c0_i32_0 = arith.constant 0 : i32
    %c0_i32_1 = arith.constant 0 : i32
    return %c0_i32, %c0_i32_0 : i32, i32
  }
  func.func @transform_6(%arg0: i32) -> (i32, i32) {
    %c0_i32 = arith.constant 0 : i32
    %c0_i32_0 = arith.constant 0 : i32
    %c0_i32_1 = arith.constant 0 : i32
    return %c0_i32, %c0_i32_0 : i32, i32
  }
  func.func @transform_7(%arg0: i32) -> (i32, i32) {
    %c0_i32 = arith.constant 0 : i32
    %c0_i32_0 = arith.constant 0 : i32
    return %arg0, %c0_i32 : i32, i32
  }
}

</mosaic_0001>

<bundles_post_ra>
// kernel: tpu_custom_call.1
= control target key start
LH: loop header
LB: loop body
LE: loop exit
PB: predicated region body
PF: predicated region fallthrough
CT: control target
= control target key end

     0   :  { %12 = vsyncpa [#allocation3], 0  ;;  %s841_s0 = inlined_call_operand.hbm [shape: f32[16,32], index: 0, kind: input, shape index: {}]   ;;  %s842_s1 = inlined_call_operand.hbm [shape: bf16[32,128], index: 1, kind: input, shape index: {}]   ;;  %s843_s2 = inlined_call_operand.vmem [shape: f32[1,128], index: 2, kind: input, shape index: {}]   ;;  %s844_s3 = inlined_call_operand.hbm [shape: bf16[128,128], index: 3, kind: input, shape index: {}]   ;;  %s845_s4 = inlined_call_operand.vmem [shape: f32[1,128], index: 4, kind: input, shape index: {}]   ;;  %s846_s5 = inlined_call_operand.hbm [shape: bf16[128,128], index: 5, kind: input, shape index: {}]   ;;  %s847_s6 = inlined_call_operand.vmem [shape: f32[1,128], index: 6, kind: input, shape index: {}]   ;;  %s848_s7 = inlined_call_operand.hbm [shape: bf16[16,128], index: 7, kind: output, shape index: {}]  }
   0x1   :  { %13 = vsyncpa [#allocation6], 0 }
   0x2   :  { %14 = vsyncpa [#allocation9], 0 }
   0x3   :  { %15 = vsyncpa [#allocation4], 0  ;;  %s678_s24 = smov [#allocation5]   ;;  %s560_s28 = scalar_lea.hbm %s842_s1, 256 }
   0x4   :  { %s33_s25 = sshll.u32 %s678_s24, 4  ;;  %p561_p0 = scmp.ne.s32.totalorder %s842_s1, %s560_s28  ;;  %s34_s25 = int_to_ptr.vmem [resolvable:$true] %s33_s25 }
   0x5   :  { %p564_p1 = scmp.lt.u32.totalorder %s560_s28, %s842_s1 }
   0x7   :  { %p566_p2 = pnand %p564_p1, %p561_p0 }
   0x9   :  { %569 = shalt.err (!%p566_p2)
}
   0xa   :  { %s570_s10 = scalar_lea.vmem %s34_s25, 256  ;;  %p575_p4 = scmp.lt.s32.totalorder %s34_s25, %s34_s25 }
   0xb   :  { %p571_p3 = scmp.ne.s32.totalorder %s34_s25, %s570_s10  ;;  %p576_p5 = scmp.lt.s32.totalorder %s570_s10, %s570_s10 }
   0xd   :  { %p577_p6 = por %p576_p5, %p575_p4 }
   0xf   :  { %p578_p7 = pnand %p577_p6, %p571_p3 }
  0x11   :  { %581 = shalt.err (!%p578_p7)
}
  0x12   :  { %s679_s11 = smov 64   ;;  %s680_s12 = smov 4  }
  0x13   :  { %39 = dma.hbm_to_vmem [thread:$0]  %s842_s1, 256, %s34_s25, [#allocation6], %s679_s11, %s679_s11, %s680_s12  }
  0x14   :  { %s681_s15 = smov [#allocation2]   ;;  %s582_s19 = scalar_lea.hbm %s841_s0, 256 }
  0x15   :  { %s21_s16 = sshll.u32 %s681_s15, 4  ;;  %p583_p8 = scmp.ne.s32.totalorder %s841_s0, %s582_s19  ;;  %s22_s16 = int_to_ptr.vmem [resolvable:$true] %s21_s16 }
  0x16   :  { %p586_p9 = scmp.lt.u32.totalorder %s582_s19, %s841_s0 }
  0x18   :  { %p588_p10 = pnand %p586_p9, %p583_p8 }
  0x1a   :  { %591 = shalt.err (!%p588_p10)
}
  0x1b   :  { %s592_s24 = scalar_lea.vmem %s22_s16, 256  ;;  %p597_p12 = scmp.lt.s32.totalorder %s22_s16, %s22_s16 }
  0x1c   :  { %p593_p11 = scmp.ne.s32.totalorder %s22_s16, %s592_s24  ;;  %p598_p13 = scmp.lt.s32.totalorder %s592_s24, %s592_s24 }
  0x1e   :  { %p599_p0 = por %p598_p13, %p597_p12 }
  0x20   :  { %p600_p1 = pnand %p599_p0, %p593_p11 }
  0x22   :  { %603 = shalt.err (!%p600_p1)
}
  0x23   :  { %s682_s1 = smov 128   ;;  %s683_s25 = smov 8  }
  0x24   :  { %27 = dma.hbm_to_vmem [thread:$0]  %s841_s0, 256, %s22_s16, [#allocation3], %s682_s1, %s682_s1, %s683_s25  }
  0x25   :  { %s684_s28 = smov [#allocation7]   ;;  %s685_s30 = smov [#allocation8]  }
  0x26   :  { %s47_s29 = sshll.u32 %s684_s28, 4  ;;  %s61_s8 = sshll.u32 %s685_s30, 4  ;;  %s48_s29 = int_to_ptr.vmem [resolvable:$true] %s47_s29  ;;  %s756_s8 = int_to_ptr.vmem [resolvable:$true] %s61_s8 }
  0x27   :  { %s604_s13 = scalar_lea.hbm %s844_s3, 1024 }
  0x28   :  { %p605_p2 = scmp.ne.s32.totalorder %s844_s3, %s604_s13  ;;  %p608_p3 = scmp.lt.u32.totalorder %s604_s13, %s844_s3 }
  0x2a   :  { %p610_p4 = pnand %p608_p3, %p605_p2 }
  0x2c   :  { %613 = shalt.err (!%p610_p4)
}
  0x2d   :  { %s614_s0 = scalar_lea.vmem %s48_s29, 1024  ;;  %p619_p6 = scmp.lt.s32.totalorder %s48_s29, %s48_s29 }
  0x2e   :  { %p615_p5 = scmp.ne.s32.totalorder %s48_s29, %s614_s0  ;;  %p620_p7 = scmp.lt.s32.totalorder %s614_s0, %s614_s0 }
  0x30   :  { %p621_p8 = por %p620_p7, %p619_p6 }
  0x32   :  { %p622_p9 = pnand %p621_p8, %p615_p5 }
  0x34   :  { %625 = shalt.err (!%p622_p9)
}
  0x35   :  { %53 = dma.hbm_to_vmem [thread:$0]  %s844_s3, 1024, %s48_s29, [#allocation6], %s679_s11, %s679_s11, %s680_s12  }
  0x36   :  { %s626_s22 = scalar_lea.hbm %s846_s5, 1024 }
  0x37   :  { %p627_p10 = scmp.ne.s32.totalorder %s846_s5, %s626_s22  ;;  %p630_p11 = scmp.lt.u32.totalorder %s626_s22, %s846_s5 }
  0x39   :  { %p632_p12 = pnand %p630_p11, %p627_p10 }
  0x3b   :  { %635 = shalt.err (!%p632_p12)
}
  0x3c   :  { %s636_s26 = scalar_lea.vmem %s756_s8, 1024  ;;  %p641_p0 = scmp.lt.s32.totalorder %s756_s8, %s756_s8 }
  0x3d   :  { %p637_p13 = scmp.ne.s32.totalorder %s756_s8, %s636_s26  ;;  %p642_p1 = scmp.lt.s32.totalorder %s636_s26, %s636_s26 }
  0x3f   :  { %p643_p2 = por %p642_p1, %p641_p0 }
  0x41   :  { %p644_p3 = pnand %p643_p2, %p637_p13 }
  0x43   :  { %647 = shalt.err (!%p644_p3)
}
  0x44   :  { %67 = dma.hbm_to_vmem [thread:$0]  %s846_s5, 1024, %s756_s8, [#allocation9], %s679_s11, %s679_s11, %s680_s12  }
  0x45   :  { %670 = dma.done.wait [#allocation3], 256  }
  0x46   :  { %671 = vsyncadd [#allocation3], 4294967040 }
  0x47   :  { %672 = dma.done.wait [#allocation6], 1280  }
  0x48   :  { %673 = vsyncadd [#allocation6], 4294966016 }
  0x49   :  { %674 = dma.done.wait [#allocation9], 1024  }
  0x4a   :  { %675 = vsyncadd [#allocation9], 4294966272  ;;  %v686_v0 = vmov 0.0   ;;  %vm687_vm0 = vmmov 0   ;;  %v538_v1 = vld [vmem:[#allocation5] sm:$0xff]   ;;  %v539_v2 = vld [vmem:[#allocation5 + $0x8] sm:$0xff]  }
  0x4b   :  { %479 = vmatprep.subr.bf16.mxu0 %v686_v0  ;;  %483 = vmatprep.mubr.msk.bf16.mxu0 %vm687_vm0, %v686_v0  ;;  %v83_v3 = vld [vmem:[#allocation2] sm:$0xff]  ;;  %v84_v4 = vld [vmem:[#allocation2 + $0x8] sm:$0xff]  ;;  %vm143_vm1 = vcmask 261120   ;;  %v542_v8 = vld [vmem:[#allocation7 + $0x10] sm:$0xff]  }
  0x4c   :  { %487 = vmatprep.subr.bf16.mxu1 %v686_v0  ;;  %503 = vmatprep.mubr.msk.bf16.mxu1 %vm687_vm0, %v686_v0  ;;  %v540_v5 = vld [vmem:[#allocation7] sm:$0xff]   ;;  %v85_v6 = vpack.c.bf16 %v84_v4, %v83_v3  ;;  %v541_v7 = vld [vmem:[#allocation7 + $0x8] sm:$0xff]   ;;  %v543_v9 = vld [vmem:[#allocation7 + $0x18] sm:$0xff]  }
  0x4d   :  { %480 = vmatpush3.bf16.msra.mxu0 %v538_v1  ;;  %488 = vmatpush3.bf16.msra.mxu1 %v540_v5  ;;  %v544_v10 = vld [vmem:[#allocation7 + $0x20] sm:$0xff]   ;;  %v545_v11 = vld [vmem:[#allocation7 + $0x28] sm:$0xff]   ;;  %v546_v12 = vld [vmem:[#allocation7 + $0x30] sm:$0xff]  }
  0x4e   :  { %481 = vmatprep.subr.bf16.mxu0 %v686_v0  ;;  %489 = vmatprep.subr.bf16.mxu1 %v686_v0  ;;  %v547_v13 = vld [vmem:[#allocation7 + $0x38] sm:$0xff]   ;;  %v548_v14 = vld [vmem:[#allocation8] sm:$0xff]   ;;  %v549_v15 = vld [vmem:[#allocation8 + $0x8] sm:$0xff]  }
  0x4f   :  { %v550_v16 = vld [vmem:[#allocation8 + $0x10] sm:$0xff]   ;;  %v551_v17 = vld [vmem:[#allocation8 + $0x18] sm:$0xff]   ;;  %v552_v18 = vld [vmem:[#allocation8 + $0x20] sm:$0xff]  }
  0x50   :  { %v553_v19 = vld [vmem:[#allocation8 + $0x28] sm:$0xff]   ;;  %v427_v20 = vld [vmem:[%s843_s2] ss:$0 sm:$0xff]  ;;  %v554_v30 = vld [vmem:[#allocation8 + $0x30] sm:$0xff]  }
  0x51   :  { %482 = vmatpush3.bf16.msra.mxu0 %v539_v2  ;;  %490 = vmatpush3.bf16.msra.mxu1 %v541_v7  ;;  %v555_v31 = vld [vmem:[#allocation8 + $0x38] sm:$0xff]   ;;  %v431_v32 = vld [vmem:[%s845_s4] ss:$0 sm:$0xff]  ;;  %s688_s4 = smov [#allocation10]  }
  0x52   :  { %507 = vmatprep.subr.bf16.mxu0 %v686_v0  ;;  %491 = vmatprep.subr.bf16.mxu1 %v686_v0  ;;  %v440_v42 = vld [vmem:[%s847_s6] ss:$0 sm:$0xff]  ;;  %s413_s6 = sshll.u32 %s688_s4, 4  ;;  %s414_s6 = int_to_ptr.vmem [resolvable:$true] %s413_s6 }
  0x53   :  { %s648_s9 = scalar_lea.vmem %s414_s6, 128  ;;  %p653_p5 = scmp.lt.s32.totalorder %s414_s6, %s414_s6 }
  0x54   :  { %484 = vmatmul.mubr.msk.bf16.vlgmr.msra.gmra.mrb[0].mxu0 %vm143_vm1, %v85_v6  ;;  %p649_p4 = scmp.ne.s32.totalorder %s414_s6, %s648_s9  ;;  %p654_p6 = scmp.lt.s32.totalorder %s648_s9, %s648_s9 }
  0x55   :  { %523 = vmatprep.mubr.msk.bf16.mxu0 %vm687_vm0, %v686_v0  ;;  %492 = vmatpush3.bf16.msra.mxu1 %v542_v8 }
  0x56   :  { %493 = vmatprep.subr.bf16.mxu1 %v686_v0  ;;  %508 = vmatpush3.bf16.msra.mxu0 %v548_v14  ;;  %p655_p7 = por %p654_p6, %p653_p5 }
  0x57   :  { %509 = vmatprep.subr.bf16.mxu0 %v686_v0 }
  0x58   :  { %p656_p8 = pnand %p655_p7, %p649_p4 }
  0x59   :  { %494 = vmatpush3.bf16.msra.mxu1 %v543_v9 }
  0x5a   :  { %495 = vmatprep.subr.bf16.mxu1 %v686_v0  ;;  %510 = vmatpush3.bf16.msra.mxu0 %v549_v15 }
  0x5b   :  { %511 = vmatprep.subr.bf16.mxu0 %v686_v0 }
  0x5d   :  { %496 = vmatpush3.bf16.msra.mxu1 %v544_v10 }
  0x5e   :  { %497 = vmatprep.subr.bf16.mxu1 %v686_v0  ;;  %512 = vmatpush3.bf16.msra.mxu0 %v550_v16 }
  0x5f   :  { %513 = vmatprep.subr.bf16.mxu0 %v686_v0 }
  0x61   :  { %498 = vmatpush3.bf16.msra.mxu1 %v545_v11 }
  0x62   :  { %499 = vmatprep.subr.bf16.mxu1 %v686_v0  ;;  %514 = vmatpush3.bf16.msra.mxu0 %v551_v17 }
  0x63   :  { %515 = vmatprep.subr.bf16.mxu0 %v686_v0 }
  0x65   :  { %500 = vmatpush3.bf16.msra.mxu1 %v546_v12 }
  0x66   :  { %501 = vmatprep.subr.bf16.mxu1 %v686_v0  ;;  %516 = vmatpush3.bf16.msra.mxu0 %v552_v18 }
  0x67   :  { %517 = vmatprep.subr.bf16.mxu0 %v686_v0 }
  0x69   :  { %502 = vmatpush3.bf16.msra.mxu1 %v547_v13 }
  0x6a   :  { %518 = vmatpush3.bf16.msra.mxu0 %v553_v19 }
  0x6b   :  { %519 = vmatprep.subr.bf16.mxu0 %v686_v0 }
  0x6e   :  { %520 = vmatpush3.bf16.msra.mxu0 %v554_v30 }
  0x6f   :  { %521 = vmatprep.subr.bf16.mxu0 %v686_v0 }
  0x72   :  { %522 = vmatpush3.bf16.msra.mxu0 %v555_v31 }
 0x127   :  { %v181_v21 = vpop.f32.mrb[0].mxu0 }
 0x128   :  { %v182_v22 = vadd.f32 %v427_v20, %v181_v21  ;;  %v485_v23 = vpop.f32.mrb[1].mxu0 }
 0x129   :  { %v184_v24 = vpop.f32.mrb[2].mxu0 }
 0x12a   :  { %v185_v25 = vadd.f32 %v427_v20, %v184_v24  ;;  %v486_v26 = vpop.f32.mrb[3].mxu0  ;;  %v188_v27 = vmax.f32 %v182_v22, 0.0 }
 0x12c   :  { %v189_v28 = vmax.f32 %v185_v25, 0.0 }
 0x12e   :  { %v190_v29 = vpack.c.bf16 %v189_v28, %v188_v27 }
 0x130   :  { %504 = vmatmul.mubr.bf16.vlgmr.msra.gmra.mrb[0].mxu1 %v190_v29 }
 0x203   :  { %v279_v33 = vpop.f32.mrb[0].mxu1 }
 0x204   :  { %v280_v34 = vadd.f32 %v431_v32, %v279_v33  ;;  %v505_v35 = vpop.f32.mrb[1].mxu1 }
 0x205   :  { %v282_v36 = vpop.f32.mrb[2].mxu1 }
 0x206   :  { %v283_v37 = vadd.f32 %v431_v32, %v282_v36  ;;  %v506_v38 = vpop.f32.mrb[3].mxu1  ;;  %v286_v39 = vmax.f32 %v280_v34, 0.0 }
 0x208   :  { %v287_v40 = vmax.f32 %v283_v37, 0.0 }
 0x20a   :  { %v288_v41 = vpack.c.bf16 %v287_v40, %v286_v39 }
 0x20c   :  { %524 = vmatmul.mubr.bf16.vlgmr.msra.gmra.mrb[4].mxu0 %v288_v41 }
 0x2df   :  { %v377_v43 = vpop.f32.mrb[4].mxu0 }
 0x2e0   :  { %v378_v44 = vadd.f32 %v440_v42, %v377_v43  ;;  %v525_v45 = vpop.f32.mrb[5].mxu0 }
 0x2e1   :  { %v380_v46 = vpop.f32.mrb[6].mxu0 }
 0x2e2   :  { %v384_v47 = vmax.f32 %v378_v44, 0.0  ;;  %v381_v48 = vadd.f32 %v440_v42, %v380_v46  ;;  %v526_v49 = vpop.f32.mrb[7].mxu0 }
 0x2e4   :  { %v385_v50 = vmax.f32 %v381_v48, 0.0  ;;  %v386_v51 = vmul.f32 %v384_v47, %v384_v47 }
 0x2e6   :  { %388 = vadd.xlane.f32.xlu0 %v386_v51  ;;  %v387_v52 = vmul.f32 %v385_v50, %v385_v50 }
 0x2ea   :  { %390 = vadd.xlane.f32.xlu0 %v387_v52 }
 0x373   :  { %v389_v53 = vpop.xlane.xlu0 %388 }
 0x374   :  { %v392_v54 = vadd.f32 1e-12, %v389_v53 }
 0x376   :  { %556 = vrsqrt.f32 %v392_v54 }
 0x377   :  { %v391_v55 = vpop.xlane.xlu0 %390 }
 0x378   :  { %v393_v56 = vadd.f32 1e-12, %v391_v55 }
 0x37a   :  { %558 = vrsqrt.f32 %v393_v56 }
 0x380   :  { %v557_v57 = vpop.eup %556 }
 0x381   :  { %v396_v59 = vmul.f32 %v557_v57, %v384_v47 }
 0x384   :  { %v559_v58 = vpop.eup %558 }
 0x385   :  { %v397_v60 = vmul.f32 %v559_v58, %v385_v50 }
 0x387   :  { %v456_v61 = vpack.c.bf16 %v397_v60, %v396_v59 }
 0x389   :  { %457 = vst [vmem:[#allocation10] sm:$0xff] %v456_v61  }
 0x38a   :  { %659 = shalt.err (!%p656_p8)
}
 0x38b   :  { %s660_s14 = scalar_lea.hbm %s848_s7, 128 }
 0x38c   :  { %p661_p9 = scmp.ne.s32.totalorder %s848_s7, %s660_s14  ;;  %p664_p10 = scmp.lt.u32.totalorder %s660_s14, %s848_s7 }
 0x38e   :  { %p666_p11 = pnand %p664_p10, %p661_p9 }
 0x390   :  { %669 = shalt.err (!%p666_p11)
}
 0x391   :  { %419 = dma.vmem_to_hbm [thread:$0]  %s414_s6, 128, %s848_s7, [#allocation4], %s679_s11, %s679_s11, %s680_s12  }
 0x392   :  { %676 = dma.done.wait [#allocation4], 128  }
 0x393   :  { %677 = vsyncadd [#allocation4], 4294967168 }
 0x394   :  { %423 = vsyncpa [#allocation3], 1 }
 0x395   :  { %424 = vsyncpa [#allocation6], 1 }
 0x396   :  { %425 = vsyncpa [#allocation9], 1 }
 0x397   :  { %426 = vsyncpa [#allocation4], 1 }

</bundles_post_ra>
